<compile_context>
chip_gen: v6e
topology: v6e:2x2x1
jax: 0.10.0
libtpu: 0.0.40
codegen_flags: <defaults>
</compile_context>

<pallas_src>
import functools
import math

import jax
import jax.numpy as jnp
from jax.experimental import pallas as pl
from jax.experimental.pallas import tpu as pltpu

N_HEAD = 4                       # config.n_head
NEG_INF = -1e30                  # finite "-inf": keeps online softmax NaN-free
VMEM_LIMIT = 48 * 1024 * 1024    # fits v7x's 64 MiB physical VMEM with headroom


def _pick_tile(n, candidates):
    """Largest candidate tile that evenly divides n, else the full extent."""
    for c in candidates:
        if n >= c and n % c == 0:
            return c
    return n


# ---------------------------------------------------------------------------
# Kernel 1: fused QKV projection (one (C, 3C) matmul instead of three (C, C)).
# ---------------------------------------------------------------------------
def _qkv_proj_kernel(x_ref, w_ref, b_ref, q_ref, k_ref, v_ref):
    # x block: (TM, C);  w: (C, 3C) bf16;  b: (1, 3C) f32.
    xb = x_ref[...].astype(jnp.bfloat16)
    qkv = jnp.dot(xb, w_ref[...], preferred_element_type=jnp.float32) + b_ref[...]
    C = q_ref.shape[-1]
    q_ref[...] = qkv[:, 0 * C:1 * C].astype(q_ref.dtype)
    k_ref[...] = qkv[:, 1 * C:2 * C].astype(k_ref.dtype)
    v_ref[...] = qkv[:, 2 * C:3 * C].astype(v_ref.dtype)


# ---------------------------------------------------------------------------
# Kernel 2: flash-style attention (online softmax) + fused output projection.
# ---------------------------------------------------------------------------
def _attn_kernel(q_ref, k_ref, v_ref, wp_ref, bp_ref, o_ref,
                 m_sc, l_sc, acc_sc, *, scale):
    qi = pl.program_id(1)
    ki = pl.program_id(2)
    nk = pl.num_programs(2)

    @pl.when(ki == 0)
    def _init():
        m_sc[...] = jnp.full(m_sc.shape, NEG_INF, jnp.float32)
        l_sc[...] = jnp.zeros(l_sc.shape, jnp.float32)
        acc_sc[...] = jnp.zeros(acc_sc.shape, jnp.float32)

    qh = q_ref[0]                      # (H, TQ, hd)  bf16
    kh = k_ref[0]                      # (H, TK, hd)  bf16
    vh = v_ref[0]                      # (H, TK, hd)  bf16
    _, TQ, _ = qh.shape
    TK = kh.shape[1]

    # Heads batched in a single MXU contraction, f32 accumulation.
    s = jnp.einsum("hqd,hkd->hqk", qh, kh,
                   preferred_element_type=jnp.float32) * scale   # (H, TQ, TK)

    # reward/causal mask built per tile from grid indices:
    # masked only where (row % 3 == 0) AND (col > row).
    # NOTE: rows with row % 3 != 0 attend to ALL columns -> never skip kv tiles.
    row = qi * TQ + jax.lax.broadcasted_iota(jnp.int32, (TQ, TK), 0)
    col = ki * TK + jax.lax.broadcasted_iota(jnp.int32, (TQ, TK), 1)
    allowed = jnp.logical_or((row % 3) != 0, col <= row)
    s = jnp.where(allowed[None, :, :], s, NEG_INF)

    # Online softmax (kept in f32; probabilities cast to bf16 only for att@v).
    m_prev = m_sc[...]
    m_new = jnp.maximum(m_prev, jnp.max(s, axis=-1, keepdims=True))
    alpha = jnp.exp(m_prev - m_new)
    p = jnp.exp(s - m_new)
    l_sc[...] = alpha * l_sc[...] + jnp.sum(p, axis=-1, keepdims=True)
    acc_sc[...] = alpha * acc_sc[...] + jnp.einsum(
        "hqk,hkd->hqd", p.astype(jnp.bfloat16), vh,
        preferred_element_type=jnp.float32)
    m_sc[...] = m_new

    @pl.when(ki == nk - 1)
    def _finalize():
        # EUP reciprocal instead of a VALU divide.
        y = acc_sc[...] * pl.reciprocal(l_sc[...], approx=True)   # (H, TQ, hd)
        # Output projection fused here: per-head matmul + head-sum avoids an
        # in-kernel (H,TQ,hd)->(TQ,C) relayout and keeps the store lane-dense.
        out = jnp.einsum("hqd,hdc->hqc", y.astype(jnp.bfloat16), wp_ref[...],
                         preferred_element_type=jnp.float32)       # (H, TQ, C)
        out = jnp.sum(out, axis=0) + bp_ref[...]                   # (TQ, C)
        # TODO(synk): attn_drop / resid_drop omitted (eval-mode identities).
        o_ref[0] = out.astype(o_ref.dtype)


# ---------------------------------------------------------------------------
# Wrapper
# ---------------------------------------------------------------------------
def causal_self_attention(x, wq, bq, wk, bk, wv, bv, wp, bp, n_head=N_HEAD):
    B, T, C = x.shape
    assert C % n_head == 0
    hd = C // n_head

    # ---- Kernel 1: fused QKV projection ----------------------------------
    wqkv = jnp.concatenate([wq, wk, wv], axis=1).astype(jnp.bfloat16)  # (C, 3C)
    bqkv = jnp.concatenate([bq, bk, bv], axis=1).astype(jnp.float32)   # (1, 3C)

    BT = B * T
    TM = _pick_tile(BT, (512, 256, 128))
    x2d = x.reshape(BT, C)

    q2d, k2d, v2d = pl.pallas_call(
        _qkv_proj_kernel,
        out_shape=tuple(jax.ShapeDtypeStruct((BT, C), jnp.bfloat16)
                        for _ in range(3)),
        grid=(BT // TM,),
        in_specs=[
            pl.BlockSpec((TM, C), lambda m: (m, 0)),
            pl.BlockSpec((C, 3 * C), lambda m: (0, 0)),
            pl.BlockSpec((1, 3 * C), lambda m: (0, 0)),
        ],
        out_specs=tuple(pl.BlockSpec((TM, C), lambda m: (m, 0))
                        for _ in range(3)),
        compiler_params=pltpu.CompilerParams(
            dimension_semantics=("parallel",),
            vmem_limit_bytes=VMEM_LIMIT),
    )(x2d, wqkv, bqkv)

    # Head split is layout plumbing — do it with XLA outside the kernels.
    def split_heads(a):
        return a.reshape(B, T, n_head, hd).transpose(0, 2, 1, 3)   # (B,H,T,hd)

    qh, kh, vh = split_heads(q2d), split_heads(k2d), split_heads(v2d)

    # ---- Kernel 2: attention + output projection --------------------------
    TQ = _pick_tile(T, (256, 128))          # query tile (128-aligned on v5e)
    TK = _pick_tile(T, (512, 256, 128))     # kv tile
    wph = wp.reshape(n_head, hd, C).astype(jnp.bfloat16)            # (H, hd, C)
    bpf = bp.astype(jnp.float32)

    kernel = functools.partial(_attn_kernel, scale=1.0 / math.sqrt(hd))
    out = pl.pallas_call(
        kernel,
        out_shape=jax.ShapeDtypeStruct((B, T, C), x.dtype),
        grid=(B, T // TQ, T // TK),
        in_specs=[
            pl.BlockSpec((1, n_head, TQ, hd), lambda b, qi, ki: (b, 0, qi, 0)),
            pl.BlockSpec((1, n_head, TK, hd), lambda b, qi, ki: (b, 0, ki, 0)),
            pl.BlockSpec((1, n_head, TK, hd), lambda b, qi, ki: (b, 0, ki, 0)),
            pl.BlockSpec((n_head, hd, C), lambda b, qi, ki: (0, 0, 0)),
            pl.BlockSpec((1, C), lambda b, qi, ki: (0, 0)),
        ],
        out_specs=pl.BlockSpec((1, TQ, C), lambda b, qi, ki: (b, qi, 0)),
        scratch_shapes=[
            pltpu.VMEM((n_head, TQ, 1), jnp.float32),    # running max
            pltpu.VMEM((n_head, TQ, 1), jnp.float32),    # running denom
            pltpu.VMEM((n_head, TQ, hd), jnp.float32),   # output accumulator
        ],
        compiler_params=pltpu.CompilerParams(
            dimension_semantics=("parallel", "parallel", "arbitrary"),
            vmem_limit_bytes=VMEM_LIMIT),
    )(qh, kh, vh, wph, bpf)
    return out


# ---------------------------------------------------------------------------
# Pure-JAX f32 reference mirroring the PyTorch forward (eval mode).
# ---------------------------------------------------------------------------
def _reference(x, wq, bq, wk, bk, wv, bv, wp, bp, n_head):
    B, T, C = x.shape
    hd = C // n_head
    q = (x @ wq + bq).reshape(B, T, n_head, hd).transpose(0, 2, 1, 3)
    k = (x @ wk + bk).reshape(B, T, n_head, hd).transpose(0, 2, 1, 3)
    v = (x @ wv + bv).reshape(B, T, n_head, hd).transpose(0, 2, 1, 3)
    att = jnp.einsum("bhqd,bhkd->bhqk", q, k) / math.sqrt(hd)
    row = jnp.arange(T)[:, None]
    col = jnp.arange(T)[None, :]
    allowed = jnp.logical_or((row % 3) != 0, col <= row)
    att = jnp.where(allowed[None, None], att, -jnp.inf)
    att = jax.nn.softmax(att, axis=-1)
    y = jnp.einsum("bhqk,bhkd->bhqd", att, v)
    y = y.transpose(0, 2, 1, 3).reshape(B, T, C)
    return y @ wp + bp


if __name__ == "__main__":
    B, T, C = 2, 8, 32
    key = jax.random.PRNGKey(0)
    ks = jax.random.split(key, 9)
    s = 1.0 / math.sqrt(C)
    x = jax.random.normal(ks[0], (B, T, C), dtype=jnp.float32)
    wq = jax.random.uniform(ks[1], (C, C), jnp.float32, -s, s)
    bq = jax.random.uniform(ks[2], (1, C), jnp.float32, -s, s)
    wk = jax.random.uniform(ks[3], (C, C), jnp.float32, -s, s)
    bk = jax.random.uniform(ks[4], (1, C), jnp.float32, -s, s)
    wv = jax.random.uniform(ks[5], (C, C), jnp.float32, -s, s)
    bv = jax.random.uniform(ks[6], (1, C), jnp.float32, -s, s)
    wp = jax.random.uniform(ks[7], (C, C), jnp.float32, -s, s)
    bp = jax.random.uniform(ks[8], (1, C), jnp.float32, -s, s)

    out = causal_self_attention(x, wq, bq, wk, bk, wv, bv, wp, bp)
    out = jax.block_until_ready(out)

    ref = _reference(x, wq, bq, wk, bk, wv, bv, wp, bp, N_HEAD)
    # bf16 MXU operands => compare with bf16-appropriate tolerance.
    assert jnp.allclose(out, ref, atol=5e-2, rtol=5e-2), "mismatch vs reference"
    print("KERNEL_OK")
</pallas_src>

<mosaic_0001>
module attributes {stable_mosaic.version = 11 : i64} {
  func.func @_qkv_proj_kernel(%arg0: i32, %arg1: memref<16x32xf32, #tpu.memory_space<vmem>>, %arg2: memref<32x96xbf16, #tpu.memory_space<vmem>>, %arg3: memref<1x96xf32, #tpu.memory_space<vmem>>, %arg4: memref<16x32xbf16, #tpu.memory_space<vmem>>, %arg5: memref<16x32xbf16, #tpu.memory_space<vmem>>, %arg6: memref<16x32xbf16, #tpu.memory_space<vmem>>) attributes {dimension_semantics = [#tpu.dimension_semantics<parallel>], iteration_bounds = array<i64: 1>, scalar_prefetch = 0 : i64, scratch_operands = 0 : i64, tpu.core_type = #tpu.core_type<tc>, window_params = [{transform_indices = @transform_0, window_bounds = array<i64: 16, 32>}, {pipeline_mode = #tpu.pipeline_mode<synchronous>, transform_indices = @transform_1, window_bounds = array<i64: 32, 96>}, {pipeline_mode = #tpu.pipeline_mode<synchronous>, transform_indices = @transform_2, window_bounds = array<i64: 1, 96>}, {transform_indices = @transform_3, window_bounds = array<i64: 16, 32>}, {transform_indices = @transform_4, window_bounds = array<i64: 16, 32>}, {transform_indices = @transform_5, window_bounds = array<i64: 16, 32>}]} {
    %c0 = arith.constant 0 : index
    %c0_0 = arith.constant 0 : index
    %0 = vector.load %arg1[%c0, %c0_0] : memref<16x32xf32, #tpu.memory_space<vmem>>, vector<16x32xf32>
    %1 = arith.truncf %0 : vector<16x32xf32> to vector<16x32xbf16>
    %c0_1 = arith.constant 0 : index
    %c0_2 = arith.constant 0 : index
    %2 = vector.load %arg2[%c0_1, %c0_2] : memref<32x96xbf16, #tpu.memory_space<vmem>>, vector<32x96xbf16>
    %cst = arith.constant dense<0.000000e+00> : vector<16x96xf32>
    %3 = tpu.matmul %1, %2, %cst {dimension_numbers = #tpu.dot_dimension_numbers<[1], [0], [0], [1], [0, 0, 1, 1], [], []>} : vector<16x32xbf16>, vector<32x96xbf16>, vector<16x96xf32> -> vector<16x96xf32>
    %c0_3 = arith.constant 0 : index
    %c0_4 = arith.constant 0 : index
    %4 = vector.load %arg3[%c0_3, %c0_4] : memref<1x96xf32, #tpu.memory_space<vmem>>, vector<1x96xf32>
    %5 = vector.broadcast %4 : vector<1x96xf32> to vector<16x96xf32>
    %6 = arith.addf %3, %5 : vector<16x96xf32>
    %7 = vector.extract_strided_slice %6 {offsets = [0, 0], sizes = [16, 32], strides = [1, 1]} : vector<16x96xf32> to vector<16x32xf32>
    %8 = arith.truncf %7 : vector<16x32xf32> to vector<16x32xbf16>
    %c0_5 = arith.constant 0 : index
    %c0_6 = arith.constant 0 : index
    %9 = vector.load %arg4[%c0_5, %c0_6] : memref<16x32xbf16, #tpu.memory_space<vmem>>, vector<16x32xbf16>
    tpu.vector_store %arg4[%c0_5, %c0_6], %8 {strides = array<i32>} : memref<16x32xbf16, #tpu.memory_space<vmem>>, vector<16x32xbf16>,
    %10 = vector.extract_strided_slice %6 {offsets = [0, 32], sizes = [16, 32], strides = [1, 1]} : vector<16x96xf32> to vector<16x32xf32>
    %11 = arith.truncf %10 : vector<16x32xf32> to vector<16x32xbf16>
    %c0_7 = arith.constant 0 : index
    %c0_8 = arith.constant 0 : index
    %12 = vector.load %arg5[%c0_7, %c0_8] : memref<16x32xbf16, #tpu.memory_space<vmem>>, vector<16x32xbf16>
    tpu.vector_store %arg5[%c0_7, %c0_8], %11 {strides = array<i32>} : memref<16x32xbf16, #tpu.memory_space<vmem>>, vector<16x32xbf16>,
    %13 = vector.extract_strided_slice %6 {offsets = [0, 64], sizes = [16, 32], strides = [1, 1]} : vector<16x96xf32> to vector<16x32xf32>
    %14 = arith.truncf %13 : vector<16x32xf32> to vector<16x32xbf16>
    %c0_9 = arith.constant 0 : index
    %c0_10 = arith.constant 0 : index
    %15 = vector.load %arg6[%c0_9, %c0_10] : memref<16x32xbf16, #tpu.memory_space<vmem>>, vector<16x32xbf16>
    tpu.vector_store %arg6[%c0_9, %c0_10], %14 {strides = array<i32>} : memref<16x32xbf16, #tpu.memory_space<vmem>>, vector<16x32xbf16>,
    return
  }
  func.func @transform_0(%arg0: i32) -> (i32, i32) {
    %c0_i32 = arith.constant 0 : i32
    %c0_i32_0 = arith.constant 0 : i32
    return %arg0, %c0_i32 : i32, i32
  }
  func.func @transform_1(%arg0: i32) -> (i32, i32) {
    %c0_i32 = arith.constant 0 : i32
    %c0_i32_0 = arith.constant 0 : i32
    %c0_i32_1 = arith.constant 0 : i32
    return %c0_i32, %c0_i32_0 : i32, i32
  }
  func.func @transform_2(%arg0: i32) -> (i32, i32) {
    %c0_i32 = arith.constant 0 : i32
    %c0_i32_0 = arith.constant 0 : i32
    %c0_i32_1 = arith.constant 0 : i32
    return %c0_i32, %c0_i32_0 : i32, i32
  }
  func.func @transform_3(%arg0: i32) -> (i32, i32) {
    %c0_i32 = arith.constant 0 : i32
    %c0_i32_0 = arith.constant 0 : i32
    return %arg0, %c0_i32 : i32, i32
  }
  func.func @transform_4(%arg0: i32) -> (i32, i32) {
    %c0_i32 = arith.constant 0 : i32
    %c0_i32_0 = arith.constant 0 : i32
    return %arg0, %c0_i32 : i32, i32
  }
  func.func @transform_5(%arg0: i32) -> (i32, i32) {
    %c0_i32 = arith.constant 0 : i32
    %c0_i32_0 = arith.constant 0 : i32
    return %arg0, %c0_i32 : i32, i32
  }
}

</mosaic_0001>

<bundles_post_ra>
// kernel: tpu_custom_call.1
= control target key start
LH: loop header
LB: loop body
LE: loop exit
PB: predicated region body
PF: predicated region fallthrough
CT: control target
= control target key end

     0   :  { %11 = vsyncpa [#allocation3], 0  ;;  %s416_s0 = inlined_call_operand.hbm [shape: f32[16,32], index: 0, kind: input, shape index: {}]   ;;  %s417_s1 = inlined_call_operand.hbm [shape: bf16[32,96], index: 1, kind: input, shape index: {}]   ;;  %s418_s2 = inlined_call_operand.vmem [shape: f32[1,96], index: 2, kind: input, shape index: {}]   ;;  %s419_s3 = inlined_call_operand.hbm [shape: bf16[16,32], index: 3, kind: output, shape index: {0}]   ;;  %s420_s4 = inlined_call_operand.hbm [shape: bf16[16,32], index: 4, kind: output, shape index: {1}]   ;;  %s421_s5 = inlined_call_operand.hbm [shape: bf16[16,32], index: 5, kind: output, shape index: {2}]  }
   0x1   :  { %12 = vsyncpa [#allocation6], 0 }
   0x2   :  { %13 = vsyncpa [#allocation4], 0 }
   0x3   :  { %14 = vsyncpa [#allocation9], 0  ;;  %s336_s18 = smov [#allocation2]  }
   0x4   :  { %s20_s19 = sshll.u32 %s336_s18, 4  ;;  %s21_s19 = int_to_ptr.vmem [resolvable:$true] %s20_s19 }
   0x5   :  { %s236_s20 = scalar_lea.vmem %s21_s19, 256  ;;  %p241_p1 = scmp.lt.s32.totalorder %s21_s19, %s21_s19 }
   0x6   :  { %p237_p0 = scmp.ne.s32.totalorder %s21_s19, %s236_s20  ;;  %p242_p2 = scmp.lt.s32.totalorder %s236_s20, %s236_s20 }
   0x8   :  { %p243_p3 = por %p242_p2, %p241_p1 }
   0xa   :  { %p244_p4 = pnand %p243_p3, %p237_p0 }
   0xc   :  { %247 = shalt.err (!%p244_p4)
}
   0xd   :  { %s337_s21 = smov 128   ;;  %s338_s22 = smov 8  }
   0xe   :  { %26 = dma.hbm_to_vmem [thread:$0]  %s416_s0, 256, %s21_s19, [#allocation3], %s337_s21, %s337_s21, %s338_s22  }
   0xf   :  { %s339_s25 = smov [#allocation5]  }
  0x10   :  { %s32_s26 = sshll.u32 %s339_s25, 4  ;;  %s33_s26 = int_to_ptr.vmem [resolvable:$true] %s32_s26 }
  0x11   :  { %s256_s27 = scalar_lea.vmem %s33_s26, 256  ;;  %p261_p6 = scmp.lt.s32.totalorder %s33_s26, %s33_s26 }
  0x12   :  { %p257_p5 = scmp.ne.s32.totalorder %s33_s26, %s256_s27  ;;  %p262_p7 = scmp.lt.s32.totalorder %s256_s27, %s256_s27 }
  0x14   :  { %p263_p8 = por %p262_p7, %p261_p6 }
  0x16   :  { %p264_p9 = pnand %p263_p8, %p257_p5 }
  0x18   :  { %267 = shalt.err (!%p264_p9)
}
  0x19   :  { %s340_s28 = smov 64   ;;  %s341_s29 = smov 4  }
  0x1a   :  { %38 = dma.hbm_to_vmem [thread:$0]  %s417_s1, 256, %s33_s26, [#allocation6], %s340_s28, %s340_s28, %s341_s29  }
  0x1b   :  { %328 = dma.done.wait [#allocation3], 256  }
  0x1c   :  { %329 = vsyncadd [#allocation3], 4294967040 }
  0x1d   :  { %330 = dma.done.wait [#allocation6], 256  }
  0x1e   :  { %331 = vsyncadd [#allocation6], 4294967040  ;;  %v342_v0 = vmov 0.0   ;;  %vm343_vm0 = vmmov 0   ;;  %v226_v1 = vld [vmem:[#allocation5 + $0x8] sm:$0xff]   ;;  %v227_v2 = vld [vmem:[#allocation5] sm:$0xff]  }
  0x1f   :  { %206 = vmatprep.subr.bf16.mxu0 %v342_v0  ;;  %210 = vmatprep.mubr.msk.bf16.mxu0 %vm343_vm0, %v342_v0  ;;  %v48_v3 = vld [vmem:[#allocation2] sm:$0xff]  ;;  %v49_v4 = vld [vmem:[#allocation2 + $0x8] sm:$0xff]  ;;  %vm74_vm1 = vcmask 261120   ;;  %vm127_vm2 = vcmask 257024   ;;  %s344_s7 = smov [#allocation7]   ;;  %s345_s9 = smov 96  }
  0x20   :  { %207 = vmatpush3.bf16.msra.mxu0 %v226_v1  ;;  %v50_v5 = vpack.c.bf16 %v49_v4, %v48_v3  ;;  %v195_v6 = vld [vmem:[%s418_s2] ss:$0 sm:$0xff]  ;;  %s151_s8 = sshll.u32 %s344_s7, 4  ;;  %s152_s8 = int_to_ptr.vmem [resolvable:$true] %s151_s8 }
  0x21   :  { %208 = vmatprep.subr.bf16.mxu0 %v342_v0  ;;  %s268_s2 = scalar_lea.vmem %s152_s8, 128  ;;  %p273_p11 = scmp.lt.s32.totalorder %s152_s8, %s152_s8 }
  0x22   :  { %p269_p10 = scmp.ne.s32.totalorder %s152_s8, %s268_s2  ;;  %p274_p12 = scmp.lt.s32.totalorder %s268_s2, %s268_s2 }
  0x24   :  { %209 = vmatpush3.bf16.msra.mxu0 %v227_v2  ;;  %p275_p13 = por %p274_p12, %p273_p11 }
  0x26   :  { %p276_p0 = pnand %p275_p13, %p269_p10 }
  0x27   :  { %211 = vmatmul.mubr.msk.bf16.vlgmr.msra.gmra.mxu0 %vm74_vm1, %v50_v5 }
  0xe7   :  { %v112_v7 = vpop.f32.mrf.mxu0 }
  0xe8   :  { %v113_v8 = vadd.f32 %v195_v6, %v112_v7 }
  0xe9   :  { %v212_v9 = vpop.f32.mrf.mxu0 }
  0xea   :  { %v201_v10 = vpack.c.bf16 %v113_v8, %v113_v8 }
  0xeb   :  { %v115_v11 = vpop.f32.mrf.mxu0 }
  0xec   :  { %v116_v12 = vadd.f32 %v195_v6, %v115_v11  ;;  %138 = vrot.lane.b32.xlu1 %v201_v10, %s340_s28  ;;  %130 = vrot.lane.b32.xlu0 %v201_v10, %s345_s9  ;;  %128 = vst.msk [vmem:[#allocation7] sm:$0xf] %vm127_vm2, %v201_v10 }
  0xed   :  { %v213_v13 = vpop.f32.mrf.mxu0 }
  0xee   :  { %v202_v14 = vpack.c.bf16 %v116_v12, %v116_v12 }
  0xf0   :  { %140 = vrot.lane.b32.xlu1 %v202_v14, %s340_s28  ;;  %132 = vrot.lane.b32.xlu0 %v202_v14, %s345_s9  ;;  %129 = vst.msk [vmem:[#allocation7 + $0x4] sm:$0xf] %vm127_vm2, %v202_v14 }
  0xf1   :  { %279 = shalt.err (!%p276_p0)
}
  0xf2   :  { %157 = dma.vmem_to_hbm [thread:$0]  %s152_s8, 128, %s419_s3, [#allocation4], %s340_s28, %s340_s28, %s341_s29  }
  0xf3   :  { %s346_s12 = smov [#allocation8]   ;;  %s347_s14 = smov [#allocation10]  }
  0xf4   :  { %s163_s13 = sshll.u32 %s346_s12, 4  ;;  %s175_s15 = sshll.u32 %s347_s14, 4  ;;  %s164_s13 = int_to_ptr.vmem [resolvable:$true] %s163_s13  ;;  %s176_s15 = int_to_ptr.vmem [resolvable:$true] %s175_s15 }
  0xf5   :  { %s288_s16 = scalar_lea.vmem %s164_s13, 128  ;;  %p293_p2 = scmp.lt.s32.totalorder %s164_s13, %s164_s13 }
  0xf6   :  { %p289_p1 = scmp.ne.s32.totalorder %s164_s13, %s288_s16  ;;  %p294_p3 = scmp.lt.s32.totalorder %s288_s16, %s288_s16 }
  0xf8   :  { %p295_p4 = por %p294_p3, %p293_p2 }
  0xfa   :  { %p296_p5 = pnand %p295_p4, %p289_p1 }
 0x15e   :  { %v139_v15 = vpop.permute.xlu1 %138  ;;  %v131_v16 = vpop.permute.xlu0 %130 }
 0x15f   :  { %144 = vst.msk [vmem:[#allocation10] sm:$0xf] %vm127_vm2, %v139_v15  ;;  %136 = vst.msk [vmem:[#allocation8] sm:$0xf] %vm127_vm2, %v131_v16 }
 0x162   :  { %v141_v17 = vpop.permute.xlu1 %140  ;;  %v133_v18 = vpop.permute.xlu0 %132 }
 0x163   :  { %145 = vst.msk [vmem:[#allocation10 + $0x4] sm:$0xf] %vm127_vm2, %v141_v17  ;;  %137 = vst.msk [vmem:[#allocation8 + $0x4] sm:$0xf] %vm127_vm2, %v133_v18 }
 0x164   :  { %299 = shalt.err (!%p296_p5)
}
 0x165   :  { %169 = dma.vmem_to_hbm [thread:$0]  %s164_s13, 128, %s420_s4, [#allocation9], %s340_s28, %s340_s28, %s341_s29  }
 0x166   :  { %s308_s18 = scalar_lea.vmem %s176_s15, 128  ;;  %p313_p7 = scmp.lt.s32.totalorder %s176_s15, %s176_s15 }
 0x167   :  { %p309_p6 = scmp.ne.s32.totalorder %s176_s15, %s308_s18  ;;  %p314_p8 = scmp.lt.s32.totalorder %s308_s18, %s308_s18 }
 0x169   :  { %p315_p9 = por %p314_p8, %p313_p7 }
 0x16b   :  { %p316_p10 = pnand %p315_p9, %p309_p6 }
 0x16d   :  { %319 = shalt.err (!%p316_p10)
}
 0x16e   :  { %181 = dma.vmem_to_hbm [thread:$0]  %s176_s15, 128, %s421_s5, [#allocation9], %s340_s28, %s340_s28, %s341_s29  }
 0x16f   :  { %332 = dma.done.wait [#allocation4], 128  }
 0x170   :  { %333 = vsyncadd [#allocation4], 4294967168 }
 0x171   :  { %334 = dma.done.wait [#allocation9], 256  }
 0x172   :  { %335 = vsyncadd [#allocation9], 4294967040 }
 0x173   :  { %191 = vsyncpa [#allocation3], 1 }
 0x174   :  { %192 = vsyncpa [#allocation6], 1 }
 0x175   :  { %193 = vsyncpa [#allocation4], 1 }
 0x176   :  { %194 = vsyncpa [#allocation9], 1 }

</bundles_post_ra>
